<compile_context>
chip_gen: v5e
topology: v5e:2x2
jax: 0.10.0
libtpu: 0.0.40
codegen_flags: <defaults>
</compile_context>

<pallas_src>
import jax
import jax.numpy as jnp
from jax.experimental import pallas as pl
from jax.experimental.pallas import tpu as pltpu


def attention_pool_kernel(x_ref, w1_ref, b1_ref, w2_ref, o_ref):
    # x_ref: (Bt, S, H)   w1: (H, H)   b1: (1, H)   w2 (row): (1, H)
    # o_ref: (Bt, H)
    Bt, S, H = x_ref.shape
    x = x_ref[...]                                             # (Bt, S, H) f32

    # hidden = tanh(x @ W1 + b1): fold batch into the MXU M dimension.
    x2d = x.reshape(Bt * S, H)
    h = jnp.tanh(
        jnp.dot(x2d, w1_ref[...], preferred_element_type=jnp.float32)
        + b1_ref[...]                                          # (1, H) broadcast
    )                                                          # (Bt*S, H)

    # scores = h @ w2 (+ b2): N=1 matmul replaced by VPU mul + lane reduce.
    # (b2 omitted: softmax over the seq axis is shift-invariant.)
    h3 = h.reshape(Bt, S, H)
    scores = jnp.sum(h3 * w2_ref[...].reshape(1, 1, H), axis=-1)   # (Bt, S)

    # Row-wise softmax over the seq (lane) axis.
    m = jnp.max(scores, axis=-1, keepdims=True)                # (Bt, 1)
    e = jnp.exp(scores - m)                                    # (Bt, S)
    denom = jnp.sum(e, axis=-1, keepdims=True)                 # (Bt, 1)
    # approx=True routes to the EUP but carries ~1e-4 relative error; keep
    # the exact reciprocal so the 1e-5 check against the f32 reference holds.
    attn = e * pl.reciprocal(denom, approx=False)              # (Bt, S)

    # context[b, h] = sum_s attn[b, s] * x[b, s, h]  -> MXU contraction.
    ctx = jnp.einsum(
        "bqs,bsh->bqh",
        attn.reshape(Bt, 1, S),
        x,
        preferred_element_type=jnp.float32,
    )                                                          # (Bt, 1, H)
    o_ref[...] = ctx.reshape(Bt, H).astype(o_ref.dtype)


def attention_layer(x, w1, b1, w2, b2=None, *, batch_tile=None):
    """Pallas forward pass of AttentionLayer.

    b2 is accepted for parity with the PyTorch module but is not fed to the
    kernel: softmax over the seq axis is invariant to a constant shift.
    """
    del b2
    B, S, H = x.shape

    if batch_tile is None:
        if B * S <= 4096:
            # Small problem: a single grid step covering the whole batch.
            batch_tile = B
        else:
            # Target ~512 MXU rows (Bt*S) per step; keep Bt a multiple of 8
            # so the (Bt, H) output block satisfies the (8, 128) tiling rule.
            rows = max(1, 512 // S)
            batch_tile = min(B, max(8, (rows // 8) * 8))
    Bt = min(batch_tile, B)
    grid = (pl.cdiv(B, Bt),)

    b1_2d = b1.reshape(1, H)
    w2_row = w2.reshape(1, H)    # lane-dense row instead of a (H, 1) column

    return pl.pallas_call(
        attention_pool_kernel,
        out_shape=jax.ShapeDtypeStruct((B, H), x.dtype),
        grid_spec=pltpu.PrefetchScalarGridSpec(
            num_scalar_prefetch=0,
            grid=grid,
            in_specs=[
                pl.BlockSpec((Bt, S, H), lambda i: (i, 0, 0)),   # x batch tile
                pl.BlockSpec((H, H), lambda i: (0, 0)),           # W1 (resident)
                pl.BlockSpec((1, H), lambda i: (0, 0)),           # b1
                pl.BlockSpec((1, H), lambda i: (0, 0)),           # w2 row
            ],
            out_specs=pl.BlockSpec((Bt, H), lambda i: (i, 0)),
        ),
        compiler_params=pltpu.CompilerParams(
            # Batch tiles are independent -> shard across the 2 TCs on v7x.
            dimension_semantics=("parallel",),
        ),
    )(x, w1, b1_2d, w2_row)


def attention_layer_ref(x, w1, b1, w2, b2):
    # pure-JAX reference mirroring the PyTorch module (b2 included here).
    scores = jnp.tanh(x @ w1 + b1) @ w2 + b2          # (B, S, 1)
    attn = jax.nn.softmax(scores, axis=1)
    return jnp.sum(x * attn, axis=1)                  # (B, H)


if __name__ == "__main__":
    B, S, H = 2, 8, 32
    key = jax.random.PRNGKey(0)
    kx, kw1, kb1, kw2, kb2 = jax.random.split(key, 5)

    x = jax.random.normal(kx, (B, S, H), dtype=jnp.float32)
    # nn.Linear shapes: Linear(H,H) -> weight (H,H), bias (H,);
    #                   Linear(H,1) -> weight (H,1), bias (1,)
    w1 = jax.random.uniform(kw1, (H, H), minval=-0.1, maxval=0.1, dtype=jnp.float32)
    b1 = jax.random.uniform(kb1, (H,), minval=-0.1, maxval=0.1, dtype=jnp.float32)
    w2 = jax.random.uniform(kw2, (H, 1), minval=-0.1, maxval=0.1, dtype=jnp.float32)
    b2 = jax.random.uniform(kb2, (1,), minval=-0.1, maxval=0.1, dtype=jnp.float32)

    out = attention_layer(x, w1, b1, w2, b2)
    out = jax.block_until_ready(out)

    ref = attention_layer_ref(x, w1, b1, w2, b2)
    assert out.shape == (B, H)
    assert jnp.allclose(out, ref, atol=1e-5, rtol=1e-5), "mismatch vs reference"

    print("KERNEL_OK")
</pallas_src>

<mosaic_0001>
module attributes {stable_mosaic.version = 11 : i64} {
  func.func @attention_pool_kernel(%arg0: i32, %arg1: memref<2x8x32xf32, #tpu.memory_space<vmem>>, %arg2: memref<32x32xf32, #tpu.memory_space<vmem>>, %arg3: memref<1x32xf32, #tpu.memory_space<vmem>>, %arg4: memref<1x32xf32, #tpu.memory_space<vmem>>, %arg5: memref<2x32xf32, #tpu.memory_space<vmem>>) attributes {dimension_semantics = [#tpu.dimension_semantics<parallel>], iteration_bounds = array<i64: 1>, scalar_prefetch = 0 : i64, scratch_operands = 0 : i64, tpu.core_type = #tpu.core_type<tc>, window_params = [{transform_indices = @transform_0, window_bounds = array<i64: 2, 8, 32>}, {pipeline_mode = #tpu.pipeline_mode<synchronous>, transform_indices = @transform_1, window_bounds = array<i64: 32, 32>}, {pipeline_mode = #tpu.pipeline_mode<synchronous>, transform_indices = @transform_2, window_bounds = array<i64: 1, 32>}, {pipeline_mode = #tpu.pipeline_mode<synchronous>, transform_indices = @transform_3, window_bounds = array<i64: 1, 32>}, {transform_indices = @transform_4, window_bounds = array<i64: 2, 32>}]} {
    %c0 = arith.constant 0 : index
    %c0_0 = arith.constant 0 : index
    %c0_1 = arith.constant 0 : index
    %0 = vector.load %arg1[%c0, %c0_0, %c0_1] : memref<2x8x32xf32, #tpu.memory_space<vmem>>, vector<2x8x32xf32>
    %1 = vector.shape_cast %0 : vector<2x8x32xf32> to vector<16x32xf32>
    %c0_2 = arith.constant 0 : index
    %c0_3 = arith.constant 0 : index
    %2 = vector.load %arg2[%c0_2, %c0_3] : memref<32x32xf32, #tpu.memory_space<vmem>>, vector<32x32xf32>
    %cst = arith.constant dense<0.000000e+00> : vector<16x32xf32>
    %3 = tpu.matmul %1, %2, %cst {dimension_numbers = #tpu.dot_dimension_numbers<[1], [0], [0], [1], [0, 0, 1, 1], [], []>} : vector<16x32xf32>, vector<32x32xf32>, vector<16x32xf32> -> vector<16x32xf32>
    %c0_4 = arith.constant 0 : index
    %c0_5 = arith.constant 0 : index
    %4 = vector.load %arg3[%c0_4, %c0_5] : memref<1x32xf32, #tpu.memory_space<vmem>>, vector<1x32xf32>
    %5 = vector.broadcast %4 : vector<1x32xf32> to vector<16x32xf32>
    %6 = arith.addf %3, %5 : vector<16x32xf32>
    %7 = math.tanh %6 : vector<16x32xf32>
    %8 = vector.shape_cast %7 : vector<16x32xf32> to vector<2x8x32xf32>
    %c0_6 = arith.constant 0 : index
    %c0_7 = arith.constant 0 : index
    %9 = vector.load %arg4[%c0_6, %c0_7] : memref<1x32xf32, #tpu.memory_space<vmem>>, vector<1x32xf32>
    %10 = vector.shape_cast %9 : vector<1x32xf32> to vector<1x1x32xf32>
    %11 = vector.broadcast %10 : vector<1x1x32xf32> to vector<2x8x32xf32>
    %12 = arith.mulf %8, %11 : vector<2x8x32xf32>
    %cst_8 = arith.constant dense<0.000000e+00> : vector<2x8xf32>
    %13 = vector.multi_reduction <add>, %12, %cst_8 [2] : vector<2x8x32xf32> to vector<2x8xf32>
    %cst_9 = arith.constant dense<0xFF800000> : vector<2xf32>
    %14 = vector.multi_reduction <maximumf>, %13, %cst_9 [1] : vector<2x8xf32> to vector<2xf32>
    %15 = vector.shape_cast %14 : vector<2xf32> to vector<2x1xf32>
    %16 = vector.broadcast %15 : vector<2x1xf32> to vector<2x8xf32>
    %17 = arith.subf %13, %16 : vector<2x8xf32>
    %18 = math.exp %17 : vector<2x8xf32>
    %cst_10 = arith.constant dense<0.000000e+00> : vector<2xf32>
    %19 = vector.multi_reduction <add>, %18, %cst_10 [1] : vector<2x8xf32> to vector<2xf32>
    %20 = vector.shape_cast %19 : vector<2xf32> to vector<2x1xf32>
    %21 = tpu.reciprocal %20 : vector<2x1xf32> -> vector<2x1xf32>
    %22 = vector.broadcast %21 : vector<2x1xf32> to vector<2x8xf32>
    %23 = arith.mulf %18, %22 : vector<2x8xf32>
    %24 = vector.shape_cast %23 : vector<2x8xf32> to vector<2x1x8xf32>
    "tpu.trace_start"() <{level = 10 : i32, message = "bqs,bsh->bqh"}> : () -> ()
    %cst_11 = arith.constant dense<0.000000e+00> : vector<2x1x32xf32>
    %25 = tpu.matmul %24, %0, %cst_11 {dimension_numbers = #tpu.dot_dimension_numbers<[2], [1], [1], [2], [0, 0, 0, 1, 1, 2], [0], [0]>} : vector<2x1x8xf32>, vector<2x8x32xf32>, vector<2x1x32xf32> -> vector<2x1x32xf32>
    "tpu.trace_stop"() : () -> ()
    %26 = vector.shape_cast %25 : vector<2x1x32xf32> to vector<2x32xf32>
    %c0_12 = arith.constant 0 : index
    %c0_13 = arith.constant 0 : index
    %27 = vector.load %arg5[%c0_12, %c0_13] : memref<2x32xf32, #tpu.memory_space<vmem>>, vector<2x32xf32>
    tpu.vector_store %arg5[%c0_12, %c0_13], %26 {strides = array<i32>} : memref<2x32xf32, #tpu.memory_space<vmem>>, vector<2x32xf32>,
    return
  }
  func.func @transform_0(%arg0: i32) -> (i32, i32, i32) {
    %c0_i32 = arith.constant 0 : i32
    %c0_i32_0 = arith.constant 0 : i32
    %c0_i32_1 = arith.constant 0 : i32
    return %arg0, %c0_i32, %c0_i32_0 : i32, i32, i32
  }
  func.func @transform_1(%arg0: i32) -> (i32, i32) {
    %c0_i32 = arith.constant 0 : i32
    %c0_i32_0 = arith.constant 0 : i32
    %c0_i32_1 = arith.constant 0 : i32
    return %c0_i32, %c0_i32_0 : i32, i32
  }
  func.func @transform_2(%arg0: i32) -> (i32, i32) {
    %c0_i32 = arith.constant 0 : i32
    %c0_i32_0 = arith.constant 0 : i32
    %c0_i32_1 = arith.constant 0 : i32
    return %c0_i32, %c0_i32_0 : i32, i32
  }
  func.func @transform_3(%arg0: i32) -> (i32, i32) {
    %c0_i32 = arith.constant 0 : i32
    %c0_i32_0 = arith.constant 0 : i32
    %c0_i32_1 = arith.constant 0 : i32
    return %c0_i32, %c0_i32_0 : i32, i32
  }
  func.func @transform_4(%arg0: i32) -> (i32, i32) {
    %c0_i32 = arith.constant 0 : i32
    %c0_i32_0 = arith.constant 0 : i32
    return %arg0, %c0_i32 : i32, i32
  }
}

</mosaic_0001>

<bundles_post_ra>
// kernel: tpu_custom_call.1
= control target key start
LH: loop header
LB: loop body
LE: loop exit
PB: predicated region body
PF: predicated region fallthrough
CT: control target
= control target key end

     0   :  { %9 = vsyncpa [#allocation3], 0  ;;  %s406_s0 = inlined_call_operand.hbm [shape: f32[2,8,32], index: 0, kind: input, shape index: {}]   ;;  %s407_s1 = inlined_call_operand.hbm [shape: f32[32,32], index: 1, kind: input, shape index: {}]   ;;  %s408_s2 = inlined_call_operand.vmem [shape: f32[1,32], index: 2, kind: input, shape index: {}]   ;;  %s409_s3 = inlined_call_operand.vmem [shape: f32[1,32], index: 3, kind: input, shape index: {}]   ;;  %s410_s4 = inlined_call_operand.hbm [shape: f32[2,32], index: 4, kind: output, shape index: {}]  }
   0x1   :  { %10 = vsyncpa [#allocation6], 0 }
   0x2   :  { %11 = vsyncpa [#allocation4], 0  ;;  %s16_s17 = sshll.u32 %s406_s0, 4  ;;  %s351_s18 = smov [#allocation2]   ;;  %s17_s17 = int_to_ptr.hbm [resolvable:$true] %s16_s17 }
   0x3   :  { %s18_s19 = sshll.u32 %s351_s18, 4  ;;  %s29_s22 = sshll.u32 %s407_s1, 4  ;;  %s19_s19 = int_to_ptr.vmem [resolvable:$true] %s18_s19  ;;  %s30_s22 = int_to_ptr.hbm [resolvable:$true] %s29_s22 }
   0x4   :  { %s352_s23 = smov 128   ;;  %s353_s24 = smov 8  }
   0x5   :  { %24 = dma.hbm_to_vmem [thread:$0]  %s17_s17, 256, %s19_s19, [#allocation3], %s352_s23, %s352_s23, %s353_s24  }
   0x6   :  { %s354_s25 = smov [#allocation5]  }
   0x7   :  { %s31_s26 = sshll.u32 %s354_s25, 4  ;;  %s32_s26 = int_to_ptr.vmem [resolvable:$true] %s31_s26 }
   0x8   :  { %37 = dma.hbm_to_vmem [thread:$0]  %s30_s22, 512, %s32_s26, [#allocation6], %s352_s23, %s352_s23, %s353_s24  }
   0x9   :  { %345 = dma.done.wait [#allocation3], 256  }
   0xa   :  { %346 = vsyncadd [#allocation3], 4294967040 }
   0xb   :  { %347 = dma.done.wait [#allocation6], 512  }
   0xc   :  { %348 = vsyncadd [#allocation6], 4294966784  ;;  %v55_v0 = vld [vmem:[#allocation5 + $0x18] sm:$0xff]  ;;  %v54_v1 = vld [vmem:[#allocation5 + $0x10] sm:$0xff]  ;;  %vm60_vm0 = vcmask 261120   ;;  %v106_v19 = vlaneseq  ;;  %vm110_vm1 = vcmask 1041409  }
   0xd   :  { %79 = vmatpush.msra.mxu0 %v55_v0  ;;  %248 = vmatpush.msra.mxu3 %v55_v0  ;;  %v50_v2 = vld [vmem:[#allocation2] sm:$0xff]  ;;  %v51_v3 = vld [vmem:[#allocation2 + $0x8] sm:$0xff]  ;;  %v53_v4 = vld [vmem:[#allocation5 + $0x8] sm:$0xff]  ;;  %vm113_vm2 = vcmask 58368   ;;  %v355_v26 = vmov 0   ;;  %vm169_vm7 = vcmask 64512  }
   0xe   :  { %187 = vmatpush.msra.mxu1 %v50_v2  ;;  %214 = vmatpush.msra.mxu2 %v51_v3  ;;  %v52_v5 = vld [vmem:[#allocation5] sm:$0xff]  ;;  %v261_v6 = vld [vmem:[%s408_s2] ss:$0 sm:$0xff]  ;;  %v107_v20 = vand.u32 127, %v106_v19  ;;  %s356_s2 = smov [#allocation7]   ;;  %s233_s5 = sshll.u32 %s410_s4, 4  ;;  %s234_s5 = int_to_ptr.hbm [resolvable:$true] %s233_s5 }
   0xf   :  { %80 = vmatpush.msra.mxu0 %v54_v1  ;;  %249 = vmatpush.msra.mxu3 %v54_v1  ;;  %v262_v10 = vld [vmem:[%s409_s3] ss:$0 sm:$0xff]  ;;  %s231_s3 = sshll.u32 %s356_s2, 4  ;;  %vm224_vm8 = vcmask 254976   ;;  %s232_s3 = int_to_ptr.vmem [resolvable:$true] %s231_s3 }
  0x10   :  { %259 = vset.pattern.permute.xlu2 %v355_v26  ;;  %258 = vset.pattern.permute.xlu1 %v355_v26 }
  0x11   :  { %81 = vmatpush.msra.mxu0 %v53_v4  ;;  %250 = vmatpush.msra.mxu3 %v53_v4 }
  0x12   :  { %260 = vset.pattern.permute.xlu0 %v355_v26 }
  0x13   :  { %82 = vmatpush.msra.mxu0 %v52_v5  ;;  %251 = vmatpush.msra.mxu3 %v52_v5 }
  0x14   :  { %244 = vmatmul.msk.f32.vlgmr.msra.gmra.mxu0 %vm60_vm0, %v50_v2  ;;  %245 = vmatmul.msk.f32.vlgmr.msra.gmra.mxu3 %vm60_vm0, %v51_v3 }
  0x91   :  { %v84_v7 = vpop.f32.mrf.mxu0 }
  0x92   :  { %v85_v8 = vadd.f32 %v261_v6, %v84_v7 }
  0x94   :  { %263 = vtanh.f32 %v85_v8 }
  0x97   :  { %v87_v9 = vpop.f32.mrf.mxu3 }
  0x98   :  { %v88_v11 = vadd.f32 %v261_v6, %v87_v9 }
  0x9a   :  { %v264_v12 = vpop.eup %263  ;;  %265 = vtanh.f32 %v88_v11 }
  0x9b   :  { %v96_v13 = vmul.f32 %v264_v12, %v262_v10 }
  0x9d   :  { %v98_v14 = vsel %vm60_vm0, %v96_v13, 0.0 }
  0x9e   :  { %99 = vadd.xlane.f32.xlu0 %v98_v14 }
  0xa0   :  { %v266_v15 = vpop.eup %265 }
  0xa1   :  { %v97_v16 = vmul.f32 %v266_v15, %v262_v10 }
  0xa3   :  { %v101_v17 = vsel %vm60_vm0, %v97_v16, 0.0 }
  0xa6   :  { %102 = vadd.xlane.f32.xlu0 %v101_v17 }
 0x111   :  { %v100_v18 = vpop.xlane.xlu0 %99 }
 0x112   :  { %v108_v22 = vperm.slane %v100_v18, %v107_v20 }
 0x119   :  { %v103_v21 = vpop.xlane.xlu0 %102 }
 0x11a   :  { %v109_v23 = vperm.slane %v103_v21, %v107_v20 }
 0x11c   :  { %v111_v24 = vsel %vm110_vm1, %v109_v23, %v108_v22 }
 0x11d   :  { %v114_v25 = vsel %vm113_vm2, %v111_v24, -inf }
 0x11e   :  { %115 = vmax.xlane.f32.xlu1 %v114_v25 }
 0x191   :  { %v116_v27 = vpop.xlane.xlu1 %115 }
 0x192   :  { %v118_v28 = vperm.slane %v116_v27, 0  ;;  %v119_v29 = vperm.slane %v116_v27, 1 }
 0x194   :  { %v122_v30 = vsub.f32 %v100_v18, %v118_v28  ;;  %v123_v31 = vsub.f32 %v103_v21, %v119_v29 }
 0x196   :  { %v124_v32 = vmul.f32 1.442695, %v122_v30  ;;  %v126_v33 = vmul.f32 1.442695, %v123_v31 }
 0x198   :  { %267 = vpow2.f32 %v124_v32 }
 0x199   :  { %269 = vpow2.f32 %v126_v33 }
 0x19e   :  { %v268_v34 = vpop.eup %267 }
 0x19f   :  { %v270_v35 = vpop.eup %269  ;;  %131 = vperm.xlu1 %258, %v268_v34  }
 0x1a0   :  { %134 = vperm.xlu2 %259, %v270_v35  }
 0x1fa   :  { %v135_v36 = vpop.permute.xlu2 %134 }
 0x1fb   :  { %v137_v38 = vperm.slane %v135_v36, %v107_v20 }
 0x211   :  { %v132_v37 = vpop.permute.xlu1 %131 }
 0x212   :  { %v136_v39 = vperm.slane %v132_v37, %v107_v20 }
 0x214   :  { %v138_v40 = vsel %vm110_vm1, %v137_v38, %v136_v39 }
 0x215   :  { %v140_v41 = vsel %vm113_vm2, %v138_v40, 0.0 }
 0x216   :  { %141 = vadd.xlane.f32.xlu2 %v140_v41 }
 0x289   :  { %v142_v42 = vpop.xlane.xlu2 %141 }
 0x28a   :  { %271 = vrcp.f32 %v142_v42  ;;  %v154_v46 = vand.u32 2147483648, %v142_v42  ;;  %v152_v48 = vand.u32 2147483647, %v142_v42  ;;  %vm148_vm4 = vweird.f32 %v142_v42 }
 0x28c   :  { %v155_v50 = vor.u32 1.1754944e-38, %v154_v46  ;;  %vm153_vm6 = vcmp.eq.f32.partialorder %v152_v48, 8.507059e+37 }
 0x290   :  { %v272_v43 = vpop.eup %271 }
 0x291   :  { %v144_v44 = vmul.f32 %v272_v43, %v142_v42  ;;  %vm149_vm3 = vweird.f32 %v272_v43 }
 0x292   :  { %vm150_vm5 = vmor %vm148_vm4, %vm149_vm3 }
 0x293   :  { %v145_v45 = vsub.f32 1.0, %v144_v44 }
 0x295   :  { %v146_v47 = vmul.f32 %v272_v43, %v145_v45 }
 0x297   :  { %v147_v49 = vadd.f32 %v272_v43, %v146_v47 }
 0x299   :  { %v151_v51 = vsel %vm150_vm5, %v272_v43, %v147_v49 }
 0x29a   :  { %v156_v52 = vsel %vm153_vm6, %v155_v50, %v151_v51 }
 0x29b   :  { %v159_v53 = vperm.slane %v156_v52, 1  ;;  %v158_v54 = vperm.slane %v156_v52, 0 }
 0x29d   :  { %v163_v55 = vmul.f32 %v270_v35, %v159_v53  ;;  %v162_v56 = vmul.f32 %v268_v34, %v158_v54 }
 0x29f   :  { %194 = vperm.xlu0 %260, %v163_v55   ;;  %166 = vperm.xlu1 %258, %v162_v56  }
 0x311   :  { %v195_v57 = vpop.permute.xlu0 %194  ;;  %v167_v58 = vpop.permute.xlu1 %166 }
 0x312   :  { %v196_v59 = vperm.slane %v195_v57, %v107_v20  ;;  %v168_v60 = vperm.slane %v167_v58, %v107_v20 }
 0x314   :  { %246 = vmatmul.msk.f32.vlgmr.msra.gmra.mxu1 %vm169_vm7, %v168_v60  ;;  %247 = vmatmul.msk.f32.vlgmr.msra.gmra.mxu2 %vm169_vm7, %v196_v59 }
 0x391   :  { %v189_v63 = vpop.f32.mrf.mxu1 }
 0x397   :  { %v216_v61 = vpop.f32.mrf.mxu2 }
 0x398   :  { %v221_v62 = vrot.slane %v216_v61, 7 }
 0x39a   :  { %v222_v0 = vsel %vm110_vm1, %v221_v62, %v189_v63 }
 0x39b   :  { %225 = vst.msk [vmem:[#allocation7] sm:$0x3] %vm224_vm8, %v222_v0 }
 0x39c   :  { %236 = dma.vmem_to_hbm [thread:$0]  %s232_s3, 32, %s234_s5, [#allocation4]  }
 0x39d   :  { %349 = dma.done.wait [#allocation4], 32  }
 0x39e   :  { %350 = vsyncadd [#allocation4], 4294967264 }
 0x39f   :  { %241 = vsyncpa [#allocation3], 1 }
 0x3a0   :  { %242 = vsyncpa [#allocation6], 1 }
 0x3a1   :  { %243 = vsyncpa [#allocation4], 1 }

</bundles_post_ra>
